<compile_context>
chip_gen: v5e
topology: v5e:2x2
jax: 0.10.0
libtpu: 0.0.40
codegen_flags: <defaults>
</compile_context>

<pallas_src>
import functools

import jax
import jax.numpy as jnp
from jax.experimental import pallas as pl
from jax.experimental.pallas import tpu as pltpu


def _actor_kernel(obs_ref, coal_ref, idx_ref, gum_ref,
                  w1o_ref, w1c_ref, w1i_ref, b1_ref,
                  w2_ref, b2_ref, w3d_ref, b3d_ref,
                  out_ref, act_ref):
    """Fused concat + 3-layer MLP + log_softmax + Gumbel-max sample, one tile."""
    f32 = jnp.float32
    # --- layer 1: concat folded into three partial matmuls ------------------
    h1 = jnp.dot(obs_ref[...], w1o_ref[...], preferred_element_type=f32)
    h1 = h1 + jnp.dot(coal_ref[...], w1c_ref[...], preferred_element_type=f32)
    h1 = h1 + jnp.dot(idx_ref[...], w1i_ref[...], preferred_element_type=f32)
    h1 = jnp.maximum(h1 + b1_ref[...], 0.0)                 # bias + ReLU in f32
    # --- layer 2 -------------------------------------------------------------
    h2 = jnp.dot(h1.astype(w2_ref.dtype), w2_ref[...], preferred_element_type=f32)
    h2 = jnp.maximum(h2 + b2_ref[...], 0.0)
    # --- layer 3 on column-duplicated W3: z = [logits | logits], [bt, 2A] ----
    z = jnp.dot(h2.astype(w3d_ref.dtype), w3d_ref[...],
                preferred_element_type=f32) + b3d_ref[...]
    a2 = z.shape[-1]
    a = a2 // 2
    cols = jax.lax.broadcasted_iota(jnp.int32, z.shape, 1)   # [bt, 2A]
    in_first = (cols < a).astype(f32)                        # 1 on logits cols
    # --- stable log-softmax over the first half (max of dup cols == max) ----
    m = jnp.max(z, axis=-1, keepdims=True)
    s = jnp.sum(jnp.exp(z - m) * in_first, axis=-1, keepdims=True)
    lse = m + jnp.log(s)
    # merged slab: [:A] stays logits, [A:] becomes logits - lse = log-probs
    out_ref[...] = (z - (1.0 - in_first) * lse).astype(out_ref.dtype)
    # --- fused Gumbel-max sample (second half of gum is -1e30 -> ignored) ----
    zg = z + gum_ref[...]
    zg_max = jnp.max(zg, axis=-1, keepdims=True)
    act = jnp.min(jnp.where(zg >= zg_max, cols, a2), axis=-1, keepdims=True)
    act_ref[...] = act.astype(jnp.int32)


def _row_spec(bt, width):
    return pl.BlockSpec((bt, width), lambda i: (i, 0))


def _full_spec(arr):
    # Constant index_map -> resident in VMEM across the batch grid.
    return pl.BlockSpec(arr.shape, lambda i: (0,) * arr.ndim)


def _round_up(x, m):
    return ((x + m - 1) // m) * m


def actor_mlp(obs, coalition, agent_idx, gumbel2, params,
              compute_dtype=jnp.bfloat16, block_rows=2048):
    """Fused Pallas actor MLP.

    Returns:
      merged [B, 2A]: cols [:A] = logits, cols [A:] = log-probs
      action [B, 1] int32: Gumbel-max sample (argmax(logits + gumbel))
    """
    w1, b1, w2, b2, w3, b3 = params
    B, so = obs.shape
    n = coalition.shape[1]
    H = w2.shape[0]
    A = w3.shape[1]

    # Split W1 into row blocks so the concat happens inside the first matmul.
    w1o, w1c, w1i = w1[:so], w1[so:so + n], w1[so + n:]
    # Duplicate layer-3 columns so [logits | logits] comes from one matmul.
    w3d = jnp.concatenate([w3, w3], axis=1)        # [H, 2A]
    b3d = jnp.concatenate([b3, b3], axis=1)        # [1, 2A]

    if compute_dtype != jnp.float32:
        cast = lambda x: x.astype(compute_dtype)
        obs, coalition, agent_idx = cast(obs), cast(coalition), cast(agent_idx)
        w1o, w1c, w1i, w2, w3d = map(cast, (w1o, w1c, w1i, w2, w3d))
    # Biases and gumbel stay f32 (all elementwise math in f32, incl. v5e).
    out_dtype = jnp.float32 if compute_dtype == jnp.float32 else compute_dtype

    # Batch tile: big (amortize grid-step overhead, larger DMAs) but capped so
    # the grid has >= 2 "parallel" steps whenever B is non-trivial, so both
    # v7x TensorCores engage.  bt is a multiple of 8 unless it equals B.
    bt = max(8, min(block_rows, _round_up(pl.cdiv(B, 2), 8)))
    if bt >= B:
        bt = B
    nb = pl.cdiv(B, bt)

    in_bytes = jnp.dtype(compute_dtype).itemsize
    out_bytes = jnp.dtype(out_dtype).itemsize
    flops = 2 * B * ((so + 2 * n) * H + H * H + H * 2 * A) + 16 * B * A
    transcendentals = B * (2 * A + 1)                       # exp + log per row
    bytes_accessed = (B * (so + 2 * n) * in_bytes           # activations in
                      + B * 2 * A * 4                       # gumbel
                      + (w1.size + w2.size + 2 * w3.size) * in_bytes
                      + (b1.size + b2.size + 2 * b3.size) * 4
                      + B * 2 * A * out_bytes + B * 4)      # merged + action

    merged, action = pl.pallas_call(
        _actor_kernel,
        out_shape=(jax.ShapeDtypeStruct((B, 2 * A), out_dtype),
                   jax.ShapeDtypeStruct((B, 1), jnp.int32)),
        grid=(nb,),
        in_specs=[
            _row_spec(bt, so), _row_spec(bt, n), _row_spec(bt, n),
            _row_spec(bt, 2 * A),
            _full_spec(w1o), _full_spec(w1c), _full_spec(w1i), _full_spec(b1),
            _full_spec(w2), _full_spec(b2),
            _full_spec(w3d), _full_spec(b3d),
        ],
        out_specs=(_row_spec(bt, 2 * A), _row_spec(bt, 1)),
        compiler_params=pltpu.CompilerParams(
            dimension_semantics=("parallel",),
            vmem_limit_bytes=32 * 1024 * 1024),
        cost_estimate=pl.CostEstimate(flops=flops,
                                      transcendentals=transcendentals,
                                      bytes_accessed=bytes_accessed),
    )(obs, coalition, agent_idx, gumbel2,
      w1o, w1c, w1i, b1, w2, b2, w3d, b3d)
    return merged, action


@functools.partial(jax.jit, static_argnames=("compute_dtype", "block_rows"))
def actor_forward(params, obs_tuple, sample_key,
                  compute_dtype=jnp.bfloat16, block_rows=2048):
    """Mirror of Actor.forward: returns (action, logits, log_probs).

    pi_dist (torch.distributions.Categorical) is represented by its
    logits / log-probs; sampling is Gumbel-max argmax fused into the kernel
    (same semantics as jax.random.categorical / Categorical(logits).sample(),
    keyed by `sample_key`).
    """
    obs, coalition, agent_idx = obs_tuple
    B = obs.shape[0]
    A = params[4].shape[1]
    g = jax.random.gumbel(sample_key, (B, A), jnp.float32)
    # Pad the duplicate half with -1e30 so in-kernel argmax ignores it.
    g2 = jnp.concatenate([g, jnp.full((B, A), -1e30, jnp.float32)], axis=-1)
    merged, action = actor_mlp(obs, coalition, agent_idx, g2, params,
                               compute_dtype=compute_dtype,
                               block_rows=block_rows)
    logits = merged[:, :A]
    log_probs = merged[:, A:]
    return action[:, 0], logits, log_probs


def init_actor_params(key, n_agents=16, action_size=4, hidden=16):
    """Deterministic init mimicking torch.nn.Linear default U[-1/sqrt(fan_in), +]."""
    in_features = 4 + 2 * n_agents
    ks = jax.random.split(key, 6)

    def linear(kw, kb, fan_in, fan_out):
        bound = 1.0 / jnp.sqrt(jnp.float32(fan_in))
        w = jax.random.uniform(kw, (fan_in, fan_out), jnp.float32, -bound, bound)
        b = jax.random.uniform(kb, (1, fan_out), jnp.float32, -bound, bound)
        return w, b

    w1, b1 = linear(ks[0], ks[1], in_features, hidden)
    w2, b2 = linear(ks[2], ks[3], hidden, hidden)
    w3, b3 = linear(ks[4], ks[5], hidden, action_size)
    return (w1, b1, w2, b2, w3, b3)


if __name__ == "__main__":
    key = jax.random.PRNGKey(0)
    k_obs, k_coal, k_idx, k_param, k_sample = jax.random.split(key, 5)

    n_agents = 16
    state_size = 4          # forward concatenates a 4-wide obs slice
    action_size = 4
    params = init_actor_params(k_param, n_agents=n_agents, action_size=action_size)

    def make_inputs(batch):
        obs = jax.random.normal(k_obs, (batch, state_size), jnp.float32)
        coalition = (jax.random.uniform(k_coal, (batch, n_agents)) > 0.5).astype(jnp.float32)
        agent_idx = jax.nn.one_hot(
            jax.random.randint(k_idx, (batch,), 0, n_agents), n_agents, dtype=jnp.float32)
        return obs, coalition, agent_idx

    def reference(params, obs, coalition, agent_idx):
        w1, b1, w2, b2, w3, b3 = params
        x = jnp.concatenate([obs, coalition, agent_idx], axis=-1)
        h = jnp.maximum(x @ w1 + b1, 0.0)
        h = jnp.maximum(h @ w2 + b2, 0.0)
        logits = h @ w3 + b3
        return logits, jax.nn.log_softmax(logits, axis=-1)

    # (batch, compute dtype, tolerance): single-block f32 path, gridded f32
    # path with a partial edge block (grid >= 2 so both v7x TCs engage), and
    # the default bf16 (halved-DMA) path.
    cases = ((8, jnp.float32, 1e-3),
             (1000, jnp.float32, 1e-3),
             (1000, jnp.bfloat16, 2e-1))
    for batch, cdt, tol in cases:
        obs, coalition, agent_idx = make_inputs(batch)
        action, logits, log_probs = actor_forward(
            params, (obs, coalition, agent_idx), k_sample, compute_dtype=cdt)
        jax.block_until_ready((action, logits, log_probs))

        ref_logits, ref_logp = reference(params, obs, coalition, agent_idx)
        assert logits.shape == (batch, action_size)
        assert log_probs.shape == (batch, action_size)
        assert action.shape == (batch,) and action.dtype == jnp.int32
        assert bool(jnp.all((action >= 0) & (action < action_size))), \
            f"action out of range (B={batch}, dtype={cdt})"
        assert jnp.allclose(logits.astype(jnp.float32), ref_logits,
                            atol=tol, rtol=tol), \
            f"Pallas logits mismatch (B={batch}, dtype={cdt})"
        assert jnp.allclose(log_probs.astype(jnp.float32), ref_logp,
                            atol=tol, rtol=tol), \
            f"Pallas log_probs mismatch (B={batch}, dtype={cdt})"
        if cdt == jnp.float32:
            # In f32 the fused Gumbel-max sample must match argmax on the
            # emitted logits with the same keyed noise, bit for bit.
            g = jax.random.gumbel(k_sample, (batch, action_size), jnp.float32)
            ref_action = jnp.argmax(logits + g, axis=-1).astype(jnp.int32)
            assert bool(jnp.array_equal(action, ref_action)), \
                f"Pallas sampled action mismatch (B={batch}, dtype={cdt})"

    print("KERNEL_OK")
</pallas_src>

<mosaic_0001>
module attributes {stable_mosaic.version = 11 : i64} {
  func.func @_actor_kernel(%arg0: i32, %arg1: memref<8x4xf32, #tpu.memory_space<vmem>>, %arg2: memref<8x16xf32, #tpu.memory_space<vmem>>, %arg3: memref<8x16xf32, #tpu.memory_space<vmem>>, %arg4: memref<8x8xf32, #tpu.memory_space<vmem>>, %arg5: memref<4x16xf32, #tpu.memory_space<vmem>>, %arg6: memref<16x16xf32, #tpu.memory_space<vmem>>, %arg7: memref<16x16xf32, #tpu.memory_space<vmem>>, %arg8: memref<1x16xf32, #tpu.memory_space<vmem>>, %arg9: memref<16x16xf32, #tpu.memory_space<vmem>>, %arg10: memref<1x16xf32, #tpu.memory_space<vmem>>, %arg11: memref<16x8xf32, #tpu.memory_space<vmem>>, %arg12: memref<1x8xf32, #tpu.memory_space<vmem>>, %arg13: memref<8x8xf32, #tpu.memory_space<vmem>>, %arg14: memref<8x1xi32, #tpu.memory_space<vmem>>) attributes {dimension_semantics = [#tpu.dimension_semantics<parallel>], iteration_bounds = array<i64: 1>, scalar_prefetch = 0 : i64, scratch_operands = 0 : i64, tpu.core_type = #tpu.core_type<tc>, window_params = [{transform_indices = @transform_0, window_bounds = array<i64: 8, 4>}, {transform_indices = @transform_1, window_bounds = array<i64: 8, 16>}, {transform_indices = @transform_2, window_bounds = array<i64: 8, 16>}, {transform_indices = @transform_3, window_bounds = array<i64: 8, 8>}, {pipeline_mode = #tpu.pipeline_mode<synchronous>, transform_indices = @transform_4, window_bounds = array<i64: 4, 16>}, {pipeline_mode = #tpu.pipeline_mode<synchronous>, transform_indices = @transform_5, window_bounds = array<i64: 16, 16>}, {pipeline_mode = #tpu.pipeline_mode<synchronous>, transform_indices = @transform_6, window_bounds = array<i64: 16, 16>}, {pipeline_mode = #tpu.pipeline_mode<synchronous>, transform_indices = @transform_7, window_bounds = array<i64: 1, 16>}, {pipeline_mode = #tpu.pipeline_mode<synchronous>, transform_indices = @transform_8, window_bounds = array<i64: 16, 16>}, {pipeline_mode = #tpu.pipeline_mode<synchronous>, transform_indices = @transform_9, window_bounds = array<i64: 1, 16>}, {pipeline_mode = #tpu.pipeline_mode<synchronous>, transform_indices = @transform_10, window_bounds = array<i64: 16, 8>}, {pipeline_mode = #tpu.pipeline_mode<synchronous>, transform_indices = @transform_11, window_bounds = array<i64: 1, 8>}, {transform_indices = @transform_12, window_bounds = array<i64: 8, 8>}, {transform_indices = @transform_13, window_bounds = array<i64: 8, 1>}]} {
    %c0 = arith.constant 0 : index
    %c0_0 = arith.constant 0 : index
    %0 = vector.load %arg1[%c0, %c0_0] : memref<8x4xf32, #tpu.memory_space<vmem>>, vector<8x4xf32>
    %c0_1 = arith.constant 0 : index
    %c0_2 = arith.constant 0 : index
    %1 = vector.load %arg5[%c0_1, %c0_2] : memref<4x16xf32, #tpu.memory_space<vmem>>, vector<4x16xf32>
    %cst = arith.constant dense<0.000000e+00> : vector<8x16xf32>
    %2 = tpu.matmul %0, %1, %cst {dimension_numbers = #tpu.dot_dimension_numbers<[1], [0], [0], [1], [0, 0, 1, 1], [], []>} : vector<8x4xf32>, vector<4x16xf32>, vector<8x16xf32> -> vector<8x16xf32>
    %c0_3 = arith.constant 0 : index
    %c0_4 = arith.constant 0 : index
    %3 = vector.load %arg2[%c0_3, %c0_4] : memref<8x16xf32, #tpu.memory_space<vmem>>, vector<8x16xf32>
    %c0_5 = arith.constant 0 : index
    %c0_6 = arith.constant 0 : index
    %4 = vector.load %arg6[%c0_5, %c0_6] : memref<16x16xf32, #tpu.memory_space<vmem>>, vector<16x16xf32>
    %cst_7 = arith.constant dense<0.000000e+00> : vector<8x16xf32>
    %5 = tpu.matmul %3, %4, %cst_7 {dimension_numbers = #tpu.dot_dimension_numbers<[1], [0], [0], [1], [0, 0, 1, 1], [], []>} : vector<8x16xf32>, vector<16x16xf32>, vector<8x16xf32> -> vector<8x16xf32>
    %6 = arith.addf %2, %5 : vector<8x16xf32>
    %c0_8 = arith.constant 0 : index
    %c0_9 = arith.constant 0 : index
    %7 = vector.load %arg3[%c0_8, %c0_9] : memref<8x16xf32, #tpu.memory_space<vmem>>, vector<8x16xf32>
    %c0_10 = arith.constant 0 : index
    %c0_11 = arith.constant 0 : index
    %8 = vector.load %arg7[%c0_10, %c0_11] : memref<16x16xf32, #tpu.memory_space<vmem>>, vector<16x16xf32>
    %cst_12 = arith.constant dense<0.000000e+00> : vector<8x16xf32>
    %9 = tpu.matmul %7, %8, %cst_12 {dimension_numbers = #tpu.dot_dimension_numbers<[1], [0], [0], [1], [0, 0, 1, 1], [], []>} : vector<8x16xf32>, vector<16x16xf32>, vector<8x16xf32> -> vector<8x16xf32>
    %10 = arith.addf %6, %9 : vector<8x16xf32>
    %c0_13 = arith.constant 0 : index
    %c0_14 = arith.constant 0 : index
    %11 = vector.load %arg8[%c0_13, %c0_14] : memref<1x16xf32, #tpu.memory_space<vmem>>, vector<1x16xf32>
    %12 = vector.broadcast %11 : vector<1x16xf32> to vector<8x16xf32>
    %13 = arith.addf %10, %12 : vector<8x16xf32>
    %cst_15 = arith.constant 0.000000e+00 : f32
    %14 = vector.broadcast %cst_15 : f32 to vector<8x16xf32>
    %15 = arith.maximumf %13, %14 : vector<8x16xf32>
    %c0_16 = arith.constant 0 : index
    %c0_17 = arith.constant 0 : index
    %16 = vector.load %arg9[%c0_16, %c0_17] : memref<16x16xf32, #tpu.memory_space<vmem>>, vector<16x16xf32>
    %cst_18 = arith.constant dense<0.000000e+00> : vector<8x16xf32>
    %17 = tpu.matmul %15, %16, %cst_18 {dimension_numbers = #tpu.dot_dimension_numbers<[1], [0], [0], [1], [0, 0, 1, 1], [], []>} : vector<8x16xf32>, vector<16x16xf32>, vector<8x16xf32> -> vector<8x16xf32>
    %c0_19 = arith.constant 0 : index
    %c0_20 = arith.constant 0 : index
    %18 = vector.load %arg10[%c0_19, %c0_20] : memref<1x16xf32, #tpu.memory_space<vmem>>, vector<1x16xf32>
    %19 = vector.broadcast %18 : vector<1x16xf32> to vector<8x16xf32>
    %20 = arith.addf %17, %19 : vector<8x16xf32>
    %cst_21 = arith.constant 0.000000e+00 : f32
    %21 = vector.broadcast %cst_21 : f32 to vector<8x16xf32>
    %22 = arith.maximumf %20, %21 : vector<8x16xf32>
    %c0_22 = arith.constant 0 : index
    %c0_23 = arith.constant 0 : index
    %23 = vector.load %arg11[%c0_22, %c0_23] : memref<16x8xf32, #tpu.memory_space<vmem>>, vector<16x8xf32>
    %cst_24 = arith.constant dense<0.000000e+00> : vector<8x8xf32>
    %24 = tpu.matmul %22, %23, %cst_24 {dimension_numbers = #tpu.dot_dimension_numbers<[1], [0], [0], [1], [0, 0, 1, 1], [], []>} : vector<8x16xf32>, vector<16x8xf32>, vector<8x8xf32> -> vector<8x8xf32>
    %c0_25 = arith.constant 0 : index
    %c0_26 = arith.constant 0 : index
    %25 = vector.load %arg12[%c0_25, %c0_26] : memref<1x8xf32, #tpu.memory_space<vmem>>, vector<1x8xf32>
    %26 = vector.broadcast %25 : vector<1x8xf32> to vector<8x8xf32>
    %27 = arith.addf %24, %26 : vector<8x8xf32>
    %28 = tpu.iota {dimensions = array<i32: 1>} : vector<8x8xi32>
    %c4_i32 = arith.constant 4 : i32
    %29 = vector.broadcast %c4_i32 : i32 to vector<8x8xi32>
    %30 = arith.cmpi slt, %28, %29 : vector<8x8xi32>
    %31 = arith.extui %30 : vector<8x8xi1> to vector<8x8xi32>
    %32 = arith.sitofp %31 : vector<8x8xi32> to vector<8x8xf32>
    %cst_27 = arith.constant dense<0xFF800000> : vector<8xf32>
    %33 = vector.multi_reduction <maximumf>, %27, %cst_27 [1] : vector<8x8xf32> to vector<8xf32>
    %34 = vector.shape_cast %33 : vector<8xf32> to vector<8x1xf32>
    %35 = vector.broadcast %34 : vector<8x1xf32> to vector<8x8xf32>
    %36 = arith.subf %27, %35 : vector<8x8xf32>
    %37 = math.exp %36 : vector<8x8xf32>
    %38 = arith.mulf %37, %32 : vector<8x8xf32>
    %cst_28 = arith.constant dense<0.000000e+00> : vector<8xf32>
    %39 = vector.multi_reduction <add>, %38, %cst_28 [1] : vector<8x8xf32> to vector<8xf32>
    %40 = vector.shape_cast %39 : vector<8xf32> to vector<8x1xf32>
    %41 = math.log %40 : vector<8x1xf32>
    %42 = arith.addf %34, %41 : vector<8x1xf32>
    %cst_29 = arith.constant 1.000000e+00 : f32
    %43 = vector.broadcast %cst_29 : f32 to vector<8x8xf32>
    %44 = arith.subf %43, %32 : vector<8x8xf32>
    %45 = vector.broadcast %42 : vector<8x1xf32> to vector<8x8xf32>
    %46 = arith.mulf %44, %45 : vector<8x8xf32>
    %47 = arith.subf %27, %46 : vector<8x8xf32>
    %c0_30 = arith.constant 0 : index
    %c0_31 = arith.constant 0 : index
    %48 = vector.load %arg13[%c0_30, %c0_31] : memref<8x8xf32, #tpu.memory_space<vmem>>, vector<8x8xf32>
    tpu.vector_store %arg13[%c0_30, %c0_31], %47 {strides = array<i32>} : memref<8x8xf32, #tpu.memory_space<vmem>>, vector<8x8xf32>,
    %c0_32 = arith.constant 0 : index
    %c0_33 = arith.constant 0 : index
    %49 = vector.load %arg4[%c0_32, %c0_33] : memref<8x8xf32, #tpu.memory_space<vmem>>, vector<8x8xf32>
    %50 = arith.addf %27, %49 : vector<8x8xf32>
    %cst_34 = arith.constant dense<0xFF800000> : vector<8xf32>
    %51 = vector.multi_reduction <maximumf>, %50, %cst_34 [1] : vector<8x8xf32> to vector<8xf32>
    %52 = vector.shape_cast %51 : vector<8xf32> to vector<8x1xf32>
    %53 = vector.broadcast %52 : vector<8x1xf32> to vector<8x8xf32>
    %54 = arith.cmpf oge, %50, %53 : vector<8x8xf32>
    %c8_i32 = arith.constant 8 : i32
    %55 = vector.broadcast %c8_i32 : i32 to vector<8x8xi32>
    %56 = arith.select %54, %28, %55 : vector<8x8xi1>, vector<8x8xi32>
    %cst_35 = arith.constant dense<2147483647> : vector<8xi32>
    %57 = vector.multi_reduction <minsi>, %56, %cst_35 [1] : vector<8x8xi32> to vector<8xi32>
    %58 = vector.shape_cast %57 : vector<8xi32> to vector<8x1xi32>
    %c0_36 = arith.constant 0 : index
    %c0_37 = arith.constant 0 : index
    %59 = vector.load %arg14[%c0_36, %c0_37] : memref<8x1xi32, #tpu.memory_space<vmem>>, vector<8x1xi32>
    tpu.vector_store %arg14[%c0_36, %c0_37], %58 {strides = array<i32>} : memref<8x1xi32, #tpu.memory_space<vmem>>, vector<8x1xi32>,
    return
  }
  func.func @transform_0(%arg0: i32) -> (i32, i32) {
    %c0_i32 = arith.constant 0 : i32
    %c0_i32_0 = arith.constant 0 : i32
    return %arg0, %c0_i32 : i32, i32
  }
  func.func @transform_1(%arg0: i32) -> (i32, i32) {
    %c0_i32 = arith.constant 0 : i32
    %c0_i32_0 = arith.constant 0 : i32
    return %arg0, %c0_i32 : i32, i32
  }
  func.func @transform_2(%arg0: i32) -> (i32, i32) {
    %c0_i32 = arith.constant 0 : i32
    %c0_i32_0 = arith.constant 0 : i32
    return %arg0, %c0_i32 : i32, i32
  }
  func.func @transform_3(%arg0: i32) -> (i32, i32) {
    %c0_i32 = arith.constant 0 : i32
    %c0_i32_0 = arith.constant 0 : i32
    return %arg0, %c0_i32 : i32, i32
  }
  func.func @transform_4(%arg0: i32) -> (i32, i32) {
    %c0_i32 = arith.constant 0 : i32
    %c0_i32_0 = arith.constant 0 : i32
    %c0_i32_1 = arith.constant 0 : i32
    return %c0_i32, %c0_i32_0 : i32, i32
  }
  func.func @transform_5(%arg0: i32) -> (i32, i32) {
    %c0_i32 = arith.constant 0 : i32
    %c0_i32_0 = arith.constant 0 : i32
    %c0_i32_1 = arith.constant 0 : i32
    return %c0_i32, %c0_i32_0 : i32, i32
  }
  func.func @transform_6(%arg0: i32) -> (i32, i32) {
    %c0_i32 = arith.constant 0 : i32
    %c0_i32_0 = arith.constant 0 : i32
    %c0_i32_1 = arith.constant 0 : i32
    return %c0_i32, %c0_i32_0 : i32, i32
  }
  func.func @transform_7(%arg0: i32) -> (i32, i32) {
    %c0_i32 = arith.constant 0 : i32
    %c0_i32_0 = arith.constant 0 : i32
    %c0_i32_1 = arith.constant 0 : i32
    return %c0_i32, %c0_i32_0 : i32, i32
  }
  func.func @transform_8(%arg0: i32) -> (i32, i32) {
    %c0_i32 = arith.constant 0 : i32
    %c0_i32_0 = arith.constant 0 : i32
    %c0_i32_1 = arith.constant 0 : i32
    return %c0_i32, %c0_i32_0 : i32, i32
  }
  func.func @transform_9(%arg0: i32) -> (i32, i32) {
    %c0_i32 = arith.constant 0 : i32
    %c0_i32_0 = arith.constant 0 : i32
    %c0_i32_1 = arith.constant 0 : i32
    return %c0_i32, %c0_i32_0 : i32, i32
  }
  func.func @transform_10(%arg0: i32) -> (i32, i32) {
    %c0_i32 = arith.constant 0 : i32
    %c0_i32_0 = arith.constant 0 : i32
    %c0_i32_1 = arith.constant 0 : i32
    return %c0_i32, %c0_i32_0 : i32, i32
  }
  func.func @transform_11(%arg0: i32) -> (i32, i32) {
    %c0_i32 = arith.constant 0 : i32
    %c0_i32_0 = arith.constant 0 : i32
    %c0_i32_1 = arith.constant 0 : i32
    return %c0_i32, %c0_i32_0 : i32, i32
  }
  func.func @transform_12(%arg0: i32) -> (i32, i32) {
    %c0_i32 = arith.constant 0 : i32
    %c0_i32_0 = arith.constant 0 : i32
    return %arg0, %c0_i32 : i32, i32
  }
  func.func @transform_13(%arg0: i32) -> (i32, i32) {
    %c0_i32 = arith.constant 0 : i32
    %c0_i32_0 = arith.constant 0 : i32
    return %arg0, %c0_i32 : i32, i32
  }
}

</mosaic_0001>

<bundles_post_ra>
// kernel: actor_forward.1
= control target key start
LH: loop header
LB: loop body
LE: loop exit
PB: predicated region body
PF: predicated region fallthrough
CT: control target
= control target key end

     0   :  { %vm76_vm0 = vcmask 1043456   ;;  %vm72_vm1 = vcmask 31744   ;;  %vm48_vm2 = vcmask 130048   ;;  %vm197_vm3 = vcmask 64512   ;;  %s396_s6 = inlined_call_operand.vmem [shape: f32[16,16], index: 6, kind: input, shape index: {}]   ;;  %s397_s2 = inlined_call_operand.vmem [shape: f32[8,16], index: 2, kind: input, shape index: {}]   ;;  %s398_s5 = inlined_call_operand.vmem [shape: f32[16,16], index: 5, kind: input, shape index: {}]   ;;  %s399_s4 = inlined_call_operand.vmem [shape: f32[4,16], index: 4, kind: input, shape index: {}]   ;;  %s400_s1 = inlined_call_operand.vmem [shape: f32[8,16], index: 1, kind: input, shape index: {}]   ;;  %s401_s0 = inlined_call_operand.vmem [shape: f32[8,4], index: 0, kind: input, shape index: {}]   ;;  %s402_s7 = inlined_call_operand.vmem [shape: f32[1,16], index: 7, kind: input, shape index: {}]   ;;  %s403_s9 = inlined_call_operand.vmem [shape: f32[1,16], index: 9, kind: input, shape index: {}]   ;;  %s404_s8 = inlined_call_operand.vmem [shape: f32[16,16], index: 8, kind: input, shape index: {}]   ;;  %s405_s10 = inlined_call_operand.vmem [shape: f32[16,8], index: 10, kind: input, shape index: {}]   ;;  %s406_s11 = inlined_call_operand.vmem [shape: f32[1,8], index: 11, kind: input, shape index: {}]   ;;  %s407_s3 = inlined_call_operand.vmem [shape: f32[8,8], index: 3, kind: input, shape index: {}]   ;;  %s408_s12 = inlined_call_operand.vmem [shape: f32[8,8], index: 12, kind: output, shape index: {0}]   ;;  %s409_s13 = inlined_call_operand.vmem [shape: s32[8,1], index: 13, kind: output, shape index: {1}]  }
   0x1   :  { %v102_v0 = vld [vmem:[%s396_s6 + $0x8] sm:$0xff]  ;;  %v101_v1 = vld [vmem:[%s396_s6] sm:$0xff]  ;;  %v192_v31 = vlaneseq  ;;  %v262_v41 = vmov 0.0   ;;  %vm237_vm7 = vcmask 7168  }
   0x2   :  { %v100_v2 = vld [vmem:[%s397_s2] sm:$0xff]  ;;  %120 = vmatpush.msra.mxu2 %v102_v0  ;;  %v47_v3 = vld [vmem:[%s398_s5 + $0x8] sm:$0xff] }
   0x3   :  { %v46_v4 = vld [vmem:[%s398_s5] sm:$0xff]  ;;  %66 = vmatpush.msra.mxu0 %v47_v3  ;;  %v134_v8 = vld [vmem:[%s404_s8 + $0x8] sm:$0xff]  ;;  %v193_v32 = vand.u32 127, %v192_v31 }
   0x4   :  { %v44_v5 = vld [vmem:[%s399_s4] sm:$0xf]  ;;  %121 = vmatpush.msra.mxu2 %v101_v1  ;;  %156 = vmatpush.msra.mxu3 %v134_v8  ;;  %v164_v10 = vld [vmem:[%s405_s10 + $0x8] sm:$0xff] }
   0x5   :  { %248 = vmatpush.msk.msra.mxu1 %vm76_vm0, %v44_v5  ;;  %v45_v6 = vld [vmem:[%s400_s1] sm:$0xff]  ;;  %250 = vmatmul.msk.f32.vlgmr.msra.gmra.mxu2 %vm48_vm2, %v100_v2  ;;  %vm194_vm5 = vcmp.lt.s32.totalorder %v193_v32, 4 }
   0x6   :  { %v43_v7 = vld [vmem:[%s401_s0] sm:$0xff]  ;;  %67 = vmatpush.msra.mxu0 %v46_v4  ;;  %v253_v42 = vsel %vm194_vm5, 1.0, %v262_v41 }
   0x7   :  { %249 = vmatmul.msk.f32.vlgmr.msra.gmra.mxu1 %vm72_vm1, %v43_v7  ;;  %247 = vmatmul.msk.f32.vlgmr.msra.gmra.mxu0 %vm48_vm2, %v45_v6  ;;  %v133_v9 = vld [vmem:[%s404_s8] sm:$0xff]  ;;  %v211_v52 = vsub.f32 1.0, %v253_v42 }
   0x8   :  { %157 = vmatpush.msra.mxu3 %v133_v9  ;;  %186 = vmatpush.msrb.mxu1 %v164_v10  ;;  %v255_v14 = vld [vmem:[%s402_s7] ss:$0 sm:$0xff] }
   0x9   :  { %v163_v19 = vld [vmem:[%s405_s10] sm:$0xff] }
   0xa   :  { %187 = vmatpush.msrb.mxu1 %v163_v19  ;;  %v256_v20 = vld [vmem:[%s403_s9] ss:$0 sm:$0xff] }
   0xb   :  { %v257_v24 = vld [vmem:[%s406_s11] ss:$0 sm:$0xff] }
   0xc   :  { %v215_v26 = vld [vmem:[%s407_s3] sm:$0xff] }
  0x84   :  { %v97_v11 = vpop.f32.mrf.mxu1  ;;  %v69_v12 = vpop.f32.mrf.mxu0 }
  0x85   :  { %v98_v13 = vadd.f32 %v97_v11, %v69_v12 }
  0x88   :  { %v123_v15 = vpop.f32.mrf.mxu2 }
  0x89   :  { %v126_v16 = vadd.f32 %v123_v15, %v98_v13 }
  0x8b   :  { %v131_v17 = vadd.f32 %v255_v14, %v126_v16 }
  0x8d   :  { %v132_v18 = vmax.f32 %v131_v17, 0.0 }
  0x8f   :  { %251 = vmatmul.msk.f32.vlgmr.msra.gmra.mxu3 %vm48_vm2, %v132_v18 }
 0x112   :  { %v159_v21 = vpop.f32.mrf.mxu3 }
 0x113   :  { %v160_v22 = vadd.f32 %v256_v20, %v159_v21 }
 0x115   :  { %v162_v23 = vmax.f32 %v160_v22, 0.0 }
 0x117   :  { %252 = vmatmul.msk.f32.vlgmr.msrb.gmra.mxu1 %vm48_vm2, %v162_v23 }
 0x194   :  { %v189_v25 = vpop.f32.mrf.mxu1 }
 0x195   :  { %v190_v27 = vadd.f32 %v257_v24, %v189_v25 }
 0x197   :  { %v216_v28 = vadd.f32 %v215_v26, %v190_v27  ;;  %v198_v30 = vsel %vm197_vm3, %v190_v27, -inf }
 0x199   :  { %v217_v29 = vsel %vm197_vm3, %v216_v28, -inf }
 0x19a   :  { %218 = vmax.xlane.f32.xlu0 %v217_v29 }
 0x1a2   :  { %199 = vmax.xlane.f32.xlu0 %v198_v30 }
 0x20d   :  { %v219_v33 = vpop.xlane.xlu0 %218 }
 0x20e   :  { %vm220_vm4 = vcmp.ge.f32.partialorder %v216_v28, %v219_v33 }
 0x20f   :  { %v221_v34 = vsel %vm220_vm4, %v193_v32, 8 }
 0x210   :  { %v222_v35 = vsel %vm197_vm3, %v221_v34, 2147483647 }
 0x211   :  { %v224_v36 = vshra.s32 %v222_v35, 16  ;;  %v223_v46 = vand.u32 65535, %v222_v35 }
 0x213   :  { %v226_v37 = vcvt.s32.f32 %v224_v36  ;;  %v225_v48 = vcvt.s32.f32 %v223_v46 }
 0x215   :  { %227 = vmin.xlane.f32.xlu1 %v226_v37  ;;  %v200_v38 = vpop.xlane.xlu0 %199 }
 0x216   :  { %v201_v39 = vsub.f32 %v190_v27, %v200_v38 }
 0x218   :  { %v202_v40 = vmul.f32 1.442695, %v201_v39 }
 0x21a   :  { %258 = vpow2.f32 %v202_v40 }
 0x220   :  { %v259_v43 = vpop.eup %258 }
 0x221   :  { %v204_v44 = vmul.f32 %v259_v43, %v253_v42 }
 0x223   :  { %v205_v45 = vsel %vm197_vm3, %v204_v44, 0.0 }
 0x224   :  { %206 = vadd.xlane.f32.xlu1 %v205_v45 }
 0x288   :  { %v228_v47 = vpop.xlane.xlu1 %227 }
 0x289   :  { %vm229_vm6 = vcmp.eq.f32.partialorder %v226_v37, %v228_v47  ;;  %v234_v57 = vcvt.f32.s32 %v228_v47 }
 0x28a   :  { %v230_v49 = vsel %vm229_vm6, %v225_v48, inf }
 0x28b   :  { %231 = vmin.xlane.f32.xlu2 %v230_v49  ;;  %v235_v59 = vshll.u32 %v234_v57, 16 }
 0x297   :  { %v207_v50 = vpop.xlane.xlu1 %206 }
 0x298   :  { %260 = vlog2.f32 %v207_v50 }
 0x29e   :  { %v261_v51 = vpop.eup %260 }
 0x29f   :  { %v209_v53 = vmul.f32 0.6931472, %v261_v51 }
 0x2a1   :  { %v210_v54 = vadd.f32 %v209_v53, %v200_v38 }
 0x2a3   :  { %v212_v55 = vmul.f32 %v211_v52, %v210_v54 }
 0x2a5   :  { %v213_v56 = vsub.f32 %v190_v27, %v212_v55 }
 0x2a7   :  { %214 = vst.msk [vmem:[%s408_s12] sm:$0xff] %vm197_vm3, %v213_v56 }
 0x2fe   :  { %v232_v58 = vpop.xlane.xlu2 %231 }
 0x2ff   :  { %v233_v60 = vcvt.f32.s32 %v232_v58 }
 0x301   :  { %v236_v61 = vadd.s32 %v235_v59, %v233_v60 }
 0x303   :  { %238 = vst.msk [vmem:[%s409_s13] sm:$0xff] %vm237_vm7, %v236_v61 }

</bundles_post_ra>
